<compile_context>
chip_gen: v5e
topology: v5e:2x2
jax: 0.10.0
libtpu: 0.0.40
codegen_flags: <defaults>
</compile_context>

<pallas_src>
import functools
import math

import jax
import jax.numpy as jnp
from jax import lax
from jax.experimental import pallas as pl
from jax.experimental.pallas import tpu as pltpu

LANE = 128      # padded hidden / fused-head width (full vreg lane width)
SUBLANE = 8


def _round_up(n, m):
    return (n + m - 1) // m * m


def _choose_tiles(B, block_b, row_unit, split_min_rows=1024):
    """Balanced batch tiles: big enough to amortize the ~0.35us per-step
    pipeline overhead, small enough to bound padding waste, and >=2 (even)
    parallel steps once there is enough work for v7x's two TensorCores."""
    Bu = _round_up(max(B, 1), row_unit)
    n = pl.cdiv(Bu, block_b)
    if n == 1 and Bu >= split_min_rows:
        n = 2                      # let v7x shard the batch across both TCs
    if n > 1 and n % 2:
        n += 1                     # prefer an even number of parallel steps
    bb = _round_up(pl.cdiv(Bu, n), row_unit)
    n = pl.cdiv(Bu, bb)            # drop any fully-padded trailing step
    return bb, n


# --------------------------------- kernel -----------------------------------
def _dueling_kernel(x_ref, w1_ref, wstack_ref, bstack_ref, o_ref, *, out_size):
    wdt = w1_ref.dtype             # weights are already in the matmul dtype

    def dot(a, w):                 # MXU matmul, f32 accumulation
        return jnp.dot(a.astype(wdt), w, preferred_element_type=jnp.float32)

    x = x_ref[...]                                            # (bb, in) f32

    # fc layer 1 + ReLU:  (bb,in) @ (in,128) -> (bb,128)   [f32 elementwise]
    h = jnp.maximum(dot(x, w1_ref[...]) + bstack_ref[0:1, :], 0.0)

    # fc layer 2 + ReLU:  (bb,128) @ (128,128) -> (bb,128)
    h = jnp.maximum(dot(h, wstack_ref[0]) + bstack_ref[1:2, :], 0.0)

    # fused heads: lanes [0,out) = advantage, lane `out` = value, rest zero
    heads = dot(h, wstack_ref[1]) + bstack_ref[2:3, :]        # (bb,128) f32

    lane = lax.broadcasted_iota(jnp.int32, heads.shape, 1)
    a_sum = jnp.sum(jnp.where(lane < out_size, heads, 0.0),
                    axis=-1, keepdims=True)
    a_mean = a_sum * (1.0 / out_size)
    v = jnp.sum(jnp.where(lane == out_size, heads, 0.0),
                axis=-1, keepdims=True)

    # q_i = v + (a_i - mean(a)); lanes >= out_size hold garbage and are
    # sliced away in the wrapper (store stays a full lane-dense 128-wide vst).
    o_ref[...] = (heads + (v - a_mean)).astype(o_ref.dtype)


# --------------------------------- wrapper ----------------------------------
def dueling_qnet_forward(x, packed, *, out_size, block_b=2048,
                         out_dtype=jnp.bfloat16, slice_output=True):
    """x: (B, in_size) f32.  packed: dict from pack_params()."""
    w1p, wstack, bstack = packed["w1"], packed["wstack"], packed["bstack"]
    B, in_size = x.shape

    # Row-tiling unit: native sublane tile of the output dtype (bf16 -> 16).
    row_unit = max(SUBLANE, 32 // jnp.dtype(out_dtype).itemsize)
    bb, n_steps = _choose_tiles(B, block_b, row_unit)
    Bp = bb * n_steps
    if Bp != B:                                   # skip pad when not needed
        x = jnp.pad(x, ((0, Bp - B), (0, 0)))

    kernel = functools.partial(_dueling_kernel, out_size=out_size)

    # Weights/biases use a constant index_map (VMEM-resident across steps) and
    # a single pipeline buffer; only x and q are tiled over the batch.
    const_mode = pl.Buffered(1)

    y = pl.pallas_call(
        kernel,
        out_shape=jax.ShapeDtypeStruct((Bp, LANE), out_dtype),
        grid_spec=pltpu.PrefetchScalarGridSpec(
            num_scalar_prefetch=0,
            grid=(n_steps,),
            in_specs=[
                pl.BlockSpec((bb, in_size), lambda i: (i, 0)),     # x batch tile
                pl.BlockSpec(w1p.shape, lambda i: (0, 0),
                             pipeline_mode=const_mode),
                pl.BlockSpec(wstack.shape, lambda i: (0, 0, 0),
                             pipeline_mode=const_mode),
                pl.BlockSpec(bstack.shape, lambda i: (0, 0),
                             pipeline_mode=const_mode),
            ],
            out_specs=pl.BlockSpec((bb, LANE), lambda i: (i, 0)),
        ),
        compiler_params=pltpu.CompilerParams(
            dimension_semantics=("parallel",)),
    )(x, w1p, wstack, bstack)

    if slice_output:
        return y[:B, :out_size]
    # Raw lane-dense buffer: rows >= B and lanes >= out_size are NOT valid Q's.
    return y


# ------------------------------ parameters ----------------------------------
def init_params(key, in_size, out_size, emb_size=64):
    """nn.Linear default init: U(-1/sqrt(fan_in), 1/sqrt(fan_in)); weights are
    stored as (in, out) so the kernel computes y = x @ W + b."""
    ks = jax.random.split(key, 8)

    def linear(kw, kb, fan_in, fan_out):
        bound = 1.0 / math.sqrt(fan_in)
        w = jax.random.uniform(kw, (fan_in, fan_out), jnp.float32, -bound, bound)
        b = jax.random.uniform(kb, (fan_out,), jnp.float32, -bound, bound)
        return w, b

    w1, b1 = linear(ks[0], ks[1], in_size, emb_size)
    w2, b2 = linear(ks[2], ks[3], emb_size, emb_size)
    wv, bv = linear(ks[4], ks[5], emb_size, 1)
    wa, ba = linear(ks[6], ks[7], emb_size, out_size)
    return dict(w1=w1, b1=b1, w2=w2, b2=b2, wv=wv, bv=bv, wa=wa, ba=ba)


def pack_params(p, emb_size, out_size, matmul_dtype=jnp.bfloat16):
    """Zero-pad to 128 lanes, fuse V/A heads into one 128-wide matrix, and
    pre-cast weight matrices to the MXU matmul dtype (do this ONCE).
    Biases stay f32: they are added to the f32 accumulator in-kernel."""
    assert emb_size <= LANE and out_size + 1 <= LANE
    in_size = p["w1"].shape[0]

    w1p = jnp.zeros((in_size, LANE), jnp.float32).at[:, :emb_size].set(p["w1"])
    w2p = jnp.zeros((LANE, LANE), jnp.float32).at[:emb_size, :emb_size].set(p["w2"])
    whd = (jnp.zeros((LANE, LANE), jnp.float32)
           .at[:emb_size, :out_size].set(p["wa"])
           .at[:emb_size, out_size:out_size + 1].set(p["wv"]))
    wstack = jnp.stack([w2p, whd])                      # (2, 128, 128)

    b1p = jnp.zeros((LANE,), jnp.float32).at[:emb_size].set(p["b1"])
    b2p = jnp.zeros((LANE,), jnp.float32).at[:emb_size].set(p["b2"])
    bhd = (jnp.zeros((LANE,), jnp.float32)
           .at[:out_size].set(p["ba"])
           .at[out_size].set(p["bv"][0]))
    bstack = jnp.stack([b1p, b2p, bhd])                 # (3, 128) f32

    return dict(w1=w1p.astype(matmul_dtype),
                wstack=wstack.astype(matmul_dtype),
                bstack=bstack)


# -------------------------------- reference ---------------------------------
def dueling_reference(x, p, matmul_dtype=jnp.float32):
    def dot(a, w):
        return jnp.dot(a.astype(matmul_dtype), w.astype(matmul_dtype),
                       preferred_element_type=jnp.float32)

    h = jnp.maximum(dot(x, p["w1"]) + p["b1"], 0.0)
    h = jnp.maximum(dot(h, p["w2"]) + p["b2"], 0.0)
    v = dot(h, p["wv"]) + p["bv"]                       # (B, 1)
    a = dot(h, p["wa"]) + p["ba"]                       # (B, out)
    return v + (a - a.mean(axis=1, keepdims=True))


# ----------------------------------- main ------------------------------------
if __name__ == "__main__":
    # LunarLander-like sizes: state dim 8, 4 actions, emb 64, batch 2.
    in_size, out_size, emb_size, batch = 8, 4, 64, 2

    key = jax.random.PRNGKey(0)
    k_params, k_x = jax.random.split(key)
    params = init_params(k_params, in_size, out_size, emb_size)
    packed = pack_params(params, emb_size, out_size)          # bf16 weights
    x = jax.random.normal(k_x, (batch, in_size), dtype=jnp.float32)

    # Tiny-B inference path (launch-latency bound): single grid step.
    y = dueling_qnet_forward(x, packed, out_size=out_size)
    y = jax.block_until_ready(y)
    assert y.shape == (batch, out_size)
    y32 = y.astype(jnp.float32)

    # Exact-math check: reference with the same bf16 matmul operands
    # (output is additionally bf16-quantized -> small atol).
    y_ref_bf16 = dueling_reference(x, params, matmul_dtype=jnp.bfloat16)
    assert jnp.allclose(y32, y_ref_bf16, atol=2e-2, rtol=2e-2), \
        "mismatch vs bf16-matched reference"

    # Sanity check vs pure-f32 math (loose: bf16 matmul operand quantization).
    y_ref_f32 = dueling_reference(x, params, matmul_dtype=jnp.float32)
    assert jnp.allclose(y32, y_ref_f32, atol=5e-2, rtol=5e-2), \
        "mismatch vs f32 reference"

    # Larger, non-multiple batch: exercises the adaptive balanced tiling and
    # the >=2-step parallel grid (v7x megacore) path.
    xb = jax.random.normal(jax.random.PRNGKey(1), (1500, in_size), jnp.float32)
    yb = jax.block_until_ready(
        dueling_qnet_forward(xb, packed, out_size=out_size))
    assert yb.shape == (1500, out_size)
    yb_ref = dueling_reference(xb, params, matmul_dtype=jnp.bfloat16)
    assert jnp.allclose(yb.astype(jnp.float32), yb_ref, atol=2e-2, rtol=2e-2), \
        "mismatch vs bf16-matched reference (large batch)"

    print("KERNEL_OK")
</pallas_src>

<mosaic_0001>
module attributes {stable_mosaic.version = 11 : i64} {
  func.func @_dueling_kernel(%arg0: i32, %arg1: memref<16x8xf32, #tpu.memory_space<vmem>>, %arg2: memref<8x128xbf16, #tpu.memory_space<vmem>>, %arg3: memref<2x128x128xbf16, #tpu.memory_space<vmem>>, %arg4: memref<3x128xf32, #tpu.memory_space<vmem>>, %arg5: memref<16x128xbf16, #tpu.memory_space<vmem>>) attributes {dimension_semantics = [#tpu.dimension_semantics<parallel>], iteration_bounds = array<i64: 1>, scalar_prefetch = 0 : i64, scratch_operands = 0 : i64, tpu.core_type = #tpu.core_type<tc>, window_params = [{transform_indices = @transform_0, window_bounds = array<i64: 16, 8>}, {pipeline_mode = #tpu.pipeline_mode<synchronous>, transform_indices = @transform_1, window_bounds = array<i64: 8, 128>}, {pipeline_mode = #tpu.pipeline_mode<synchronous>, transform_indices = @transform_2, window_bounds = array<i64: 2, 128, 128>}, {pipeline_mode = #tpu.pipeline_mode<synchronous>, transform_indices = @transform_3, window_bounds = array<i64: 3, 128>}, {transform_indices = @transform_4, window_bounds = array<i64: 16, 128>}]} {
    %c0 = arith.constant 0 : index
    %c0_0 = arith.constant 0 : index
    %0 = vector.load %arg1[%c0, %c0_0] : memref<16x8xf32, #tpu.memory_space<vmem>>, vector<16x8xf32>
    %c0_1 = arith.constant 0 : index
    %c0_2 = arith.constant 0 : index
    %1 = vector.load %arg2[%c0_1, %c0_2] : memref<8x128xbf16, #tpu.memory_space<vmem>>, vector<8x128xbf16>
    %2 = arith.truncf %0 : vector<16x8xf32> to vector<16x8xbf16>
    %cst = arith.constant dense<0.000000e+00> : vector<16x128xf32>
    %3 = tpu.matmul %2, %1, %cst {dimension_numbers = #tpu.dot_dimension_numbers<[1], [0], [0], [1], [0, 0, 1, 1], [], []>} : vector<16x8xbf16>, vector<8x128xbf16>, vector<16x128xf32> -> vector<16x128xf32>
    %c0_3 = arith.constant 0 : index
    %c0_4 = arith.constant 0 : index
    %4 = vector.load %arg4[%c0_3, %c0_4] : memref<3x128xf32, #tpu.memory_space<vmem>>, vector<1x128xf32>
    %5 = vector.broadcast %4 : vector<1x128xf32> to vector<16x128xf32>
    %6 = arith.addf %3, %5 : vector<16x128xf32>
    %cst_5 = arith.constant 0.000000e+00 : f32
    %7 = vector.broadcast %cst_5 : f32 to vector<16x128xf32>
    %8 = arith.maximumf %6, %7 : vector<16x128xf32>
    %c0_6 = arith.constant 0 : index
    %c0_7 = arith.constant 0 : index
    %c0_8 = arith.constant 0 : index
    %9 = vector.load %arg3[%c0_6, %c0_7, %c0_8] : memref<2x128x128xbf16, #tpu.memory_space<vmem>>, vector<1x128x128xbf16>
    %10 = vector.shape_cast %9 : vector<1x128x128xbf16> to vector<128x128xbf16>
    %11 = arith.truncf %8 : vector<16x128xf32> to vector<16x128xbf16>
    %cst_9 = arith.constant dense<0.000000e+00> : vector<16x128xf32>
    %12 = tpu.matmul %11, %10, %cst_9 {dimension_numbers = #tpu.dot_dimension_numbers<[1], [0], [0], [1], [0, 0, 1, 1], [], []>} : vector<16x128xbf16>, vector<128x128xbf16>, vector<16x128xf32> -> vector<16x128xf32>
    %c1 = arith.constant 1 : index
    %c0_10 = arith.constant 0 : index
    %13 = vector.load %arg4[%c1, %c0_10] : memref<3x128xf32, #tpu.memory_space<vmem>>, vector<1x128xf32>
    %14 = vector.broadcast %13 : vector<1x128xf32> to vector<16x128xf32>
    %15 = arith.addf %12, %14 : vector<16x128xf32>
    %cst_11 = arith.constant 0.000000e+00 : f32
    %16 = vector.broadcast %cst_11 : f32 to vector<16x128xf32>
    %17 = arith.maximumf %15, %16 : vector<16x128xf32>
    %c1_12 = arith.constant 1 : index
    %c0_13 = arith.constant 0 : index
    %c0_14 = arith.constant 0 : index
    %18 = vector.load %arg3[%c1_12, %c0_13, %c0_14] : memref<2x128x128xbf16, #tpu.memory_space<vmem>>, vector<1x128x128xbf16>
    %19 = vector.shape_cast %18 : vector<1x128x128xbf16> to vector<128x128xbf16>
    %20 = arith.truncf %17 : vector<16x128xf32> to vector<16x128xbf16>
    %cst_15 = arith.constant dense<0.000000e+00> : vector<16x128xf32>
    %21 = tpu.matmul %20, %19, %cst_15 {dimension_numbers = #tpu.dot_dimension_numbers<[1], [0], [0], [1], [0, 0, 1, 1], [], []>} : vector<16x128xbf16>, vector<128x128xbf16>, vector<16x128xf32> -> vector<16x128xf32>
    %c2 = arith.constant 2 : index
    %c0_16 = arith.constant 0 : index
    %22 = vector.load %arg4[%c2, %c0_16] : memref<3x128xf32, #tpu.memory_space<vmem>>, vector<1x128xf32>
    %23 = vector.broadcast %22 : vector<1x128xf32> to vector<16x128xf32>
    %24 = arith.addf %21, %23 : vector<16x128xf32>
    %25 = tpu.iota {dimensions = array<i32: 1>} : vector<16x128xi32>
    %c4_i32 = arith.constant 4 : i32
    %26 = vector.broadcast %c4_i32 : i32 to vector<16x128xi32>
    %27 = arith.cmpi slt, %25, %26 : vector<16x128xi32>
    %cst_17 = arith.constant 0.000000e+00 : f32
    %28 = vector.broadcast %cst_17 : f32 to vector<16x128xf32>
    %29 = arith.select %27, %24, %28 : vector<16x128xi1>, vector<16x128xf32>
    %cst_18 = arith.constant dense<0.000000e+00> : vector<16xf32>
    %30 = vector.multi_reduction <add>, %29, %cst_18 [1] : vector<16x128xf32> to vector<16xf32>
    %31 = vector.shape_cast %30 : vector<16xf32> to vector<16x1xf32>
    %cst_19 = arith.constant 2.500000e-01 : f32
    %32 = vector.broadcast %cst_19 : f32 to vector<16x1xf32>
    %33 = arith.mulf %31, %32 : vector<16x1xf32>
    %c4_i32_20 = arith.constant 4 : i32
    %34 = vector.broadcast %c4_i32_20 : i32 to vector<16x128xi32>
    %35 = arith.cmpi eq, %25, %34 : vector<16x128xi32>
    %cst_21 = arith.constant 0.000000e+00 : f32
    %36 = vector.broadcast %cst_21 : f32 to vector<16x128xf32>
    %37 = arith.select %35, %24, %36 : vector<16x128xi1>, vector<16x128xf32>
    %cst_22 = arith.constant dense<0.000000e+00> : vector<16xf32>
    %38 = vector.multi_reduction <add>, %37, %cst_22 [1] : vector<16x128xf32> to vector<16xf32>
    %39 = vector.shape_cast %38 : vector<16xf32> to vector<16x1xf32>
    %40 = arith.subf %39, %33 : vector<16x1xf32>
    %41 = vector.broadcast %40 : vector<16x1xf32> to vector<16x128xf32>
    %42 = arith.addf %24, %41 : vector<16x128xf32>
    %43 = arith.truncf %42 : vector<16x128xf32> to vector<16x128xbf16>
    %c0_23 = arith.constant 0 : index
    %c0_24 = arith.constant 0 : index
    %44 = vector.load %arg5[%c0_23, %c0_24] : memref<16x128xbf16, #tpu.memory_space<vmem>>, vector<16x128xbf16>
    tpu.vector_store %arg5[%c0_23, %c0_24], %43 {strides = array<i32>} : memref<16x128xbf16, #tpu.memory_space<vmem>>, vector<16x128xbf16>,
    return
  }
  func.func @transform_0(%arg0: i32) -> (i32, i32) {
    %c0_i32 = arith.constant 0 : i32
    %c0_i32_0 = arith.constant 0 : i32
    return %arg0, %c0_i32 : i32, i32
  }
  func.func @transform_1(%arg0: i32) -> (i32, i32) {
    %c0_i32 = arith.constant 0 : i32
    %c0_i32_0 = arith.constant 0 : i32
    %c0_i32_1 = arith.constant 0 : i32
    return %c0_i32, %c0_i32_0 : i32, i32
  }
  func.func @transform_2(%arg0: i32) -> (i32, i32, i32) {
    %c0_i32 = arith.constant 0 : i32
    %c0_i32_0 = arith.constant 0 : i32
    %c0_i32_1 = arith.constant 0 : i32
    %c0_i32_2 = arith.constant 0 : i32
    return %c0_i32, %c0_i32_0, %c0_i32_1 : i32, i32, i32
  }
  func.func @transform_3(%arg0: i32) -> (i32, i32) {
    %c0_i32 = arith.constant 0 : i32
    %c0_i32_0 = arith.constant 0 : i32
    %c0_i32_1 = arith.constant 0 : i32
    return %c0_i32, %c0_i32_0 : i32, i32
  }
  func.func @transform_4(%arg0: i32) -> (i32, i32) {
    %c0_i32 = arith.constant 0 : i32
    %c0_i32_0 = arith.constant 0 : i32
    return %arg0, %c0_i32 : i32, i32
  }
}

</mosaic_0001>

<bundles_post_ra>
// kernel: tpu_custom_call.1
= control target key start
LH: loop header
LB: loop body
LE: loop exit
PB: predicated region body
PF: predicated region fallthrough
CT: control target
= control target key end

     0   :  { %9 = vsyncpa [#allocation3], 0  ;;  %s479_s0 = inlined_call_operand.vmem [shape: f32[16,8], index: 0, kind: input, shape index: {}]   ;;  %s480_s1 = inlined_call_operand.vmem [shape: bf16[8,128], index: 1, kind: input, shape index: {}]   ;;  %s481_s2 = inlined_call_operand.hbm [shape: bf16[2,128,128], index: 2, kind: input, shape index: {}]   ;;  %s482_s3 = inlined_call_operand.vmem [shape: f32[3,128], index: 3, kind: input, shape index: {}]   ;;  %s483_s4 = inlined_call_operand.hbm [shape: bf16[16,128], index: 4, kind: output, shape index: {}]  }
   0x1   :  { %10 = vsyncpa [#allocation4], 0  ;;  %s19_s17 = sshll.u32 %s481_s2, 4  ;;  %s420_s18 = smov [#allocation2]   ;;  %s20_s17 = int_to_ptr.hbm [resolvable:$true] %s19_s17 }
   0x2   :  { %s21_s19 = sshll.u32 %s420_s18, 4  ;;  %s421_s20 = smov 64   ;;  %s22_s19 = int_to_ptr.vmem [resolvable:$true] %s21_s19 }
   0x3   :  { %s422_s21 = smov 4  }
   0x4   :  { %27 = dma.hbm_to_vmem [thread:$0]  %s20_s17, 2048, %s22_s19, [#allocation3], %s421_s20, %s421_s20, %s422_s21  }
   0x5   :  { %416 = dma.done.wait [#allocation3], 2048  }
   0x6   :  { %417 = vsyncadd [#allocation3], 4294965248  ;;  %vm45_vm0 = vcmask 1043456   ;;  %v37_v0 = vld [vmem:[%s480_s1] sm:$0xf]  ;;  %v36_v2 = vld [vmem:[%s479_s0 + $0x8] sm:$0xff]  ;;  %v230_v37 = vlaneseq }
   0x7   :  { %v35_v1 = vld [vmem:[%s479_s0] sm:$0xff]  ;;  %v47_v3 = vsel %vm45_vm0, %v37_v0, 0  ;;  %v347_v5 = vld [vmem:[#allocation2 + $0x38] sm:$0xff]  ;;  %vm41_vm1 = vcmask 64512   ;;  %v346_v6 = vld [vmem:[#allocation2 + $0x30] sm:$0xff]  ;;  %s262_s8 = sshll.u32 %s483_s4, 4  ;;  %s263_s8 = int_to_ptr.hbm [resolvable:$true] %s262_s8 }
   0x8   :  { %v38_v4 = vpack.c.bf16 %v36_v2, %v35_v1  ;;  %56 = vmatpush.bf16.msra.mxu0 %v47_v3  ;;  %132 = vmatpush.bf16.msra.mxu1 %v347_v5  ;;  %v345_v7 = vld [vmem:[#allocation2 + $0x28] sm:$0xff]  ;;  %v344_v8 = vld [vmem:[#allocation2 + $0x20] sm:$0xff]  ;;  %v343_v9 = vld [vmem:[#allocation2 + $0x18] sm:$0xff]  ;;  %v231_v38 = vand.u32 127, %v230_v37 }
   0x9   :  { %v342_v10 = vld [vmem:[#allocation2 + $0x10] sm:$0xff]  ;;  %v341_v11 = vld [vmem:[#allocation2 + $0x8] sm:$0xff]  ;;  %v340_v12 = vld [vmem:[#allocation2] sm:$0xff] }
   0xa   :  { %v355_v13 = vld [vmem:[#allocation2 + $0x78] sm:$0xff]  ;;  %v354_v14 = vld [vmem:[#allocation2 + $0x70] sm:$0xff]  ;;  %v353_v15 = vld [vmem:[#allocation2 + $0x68] sm:$0xff]  ;;  %vm241_vm2 = vcmp.eq.s32.totalorder %v231_v38, 4  ;;  %vm232_vm3 = vcmp.lt.s32.totalorder %v231_v38, 4 }
   0xb   :  { %275 = vmatmul.msk.bf16.vlgmr.msra.gmra.mxu0 %vm41_vm1, %v38_v4  ;;  %216 = vmatpush.bf16.msra.mxu2 %v355_v13  ;;  %v352_v16 = vld [vmem:[#allocation2 + $0x60] sm:$0xff]  ;;  %v351_v25 = vld [vmem:[#allocation2 + $0x58] sm:$0xff]  ;;  %v350_v26 = vld [vmem:[#allocation2 + $0x50] sm:$0xff] }
   0xc   :  { %133 = vmatpush.bf16.msra.mxu1 %v346_v6  ;;  %v365_v18 = vld [vmem:[%s482_s3] ss:$0 sm:$0xff]  ;;  %v349_v27 = vld [vmem:[#allocation2 + $0x48] sm:$0xff]  ;;  %v366_v30 = vld [vmem:[%s482_s3 + $0x1] ss:$0 sm:$0xff] }
   0xd   :  { %v348_v28 = vld [vmem:[#allocation2 + $0x40] sm:$0xff] }
   0xe   :  { %v367_v39 = vld [vmem:[%s482_s3 + $0x2] ss:$0 sm:$0xff]  ;;  %s423_s3 = smov [#allocation5]  }
   0xf   :  { %217 = vmatpush.bf16.msra.mxu2 %v354_v14  ;;  %s260_s5 = sshll.u32 %s423_s3, 4  ;;  %s261_s5 = int_to_ptr.vmem [resolvable:$true] %s260_s5 }
  0x10   :  { %134 = vmatpush.bf16.msra.mxu1 %v345_v7 }
  0x13   :  { %218 = vmatpush.bf16.msra.mxu2 %v353_v15 }
  0x14   :  { %135 = vmatpush.bf16.msra.mxu1 %v344_v8 }
  0x17   :  { %219 = vmatpush.bf16.msra.mxu2 %v352_v16 }
  0x18   :  { %136 = vmatpush.bf16.msra.mxu1 %v343_v9 }
  0x1b   :  { %220 = vmatpush.bf16.msra.mxu2 %v351_v25 }
  0x1c   :  { %137 = vmatpush.bf16.msra.mxu1 %v342_v10 }
  0x1f   :  { %221 = vmatpush.bf16.msra.mxu2 %v350_v26 }
  0x20   :  { %138 = vmatpush.bf16.msra.mxu1 %v341_v11 }
  0x23   :  { %222 = vmatpush.bf16.msra.mxu2 %v349_v27 }
  0x24   :  { %139 = vmatpush.bf16.msra.mxu1 %v340_v12 }
  0x27   :  { %223 = vmatpush.bf16.msra.mxu2 %v348_v28 }
  0x88   :  { %v58_v17 = vpop.f32.mrf.mxu0 }
  0x89   :  { %v59_v19 = vadd.f32 %v365_v18, %v58_v17 }
  0x8b   :  { %v63_v22 = vmax.f32 %v59_v19, 0.0 }
  0x90   :  { %v60_v20 = vpop.f32.mrf.mxu0 }
  0x91   :  { %v61_v21 = vadd.f32 %v365_v18, %v60_v20 }
  0x93   :  { %v64_v23 = vmax.f32 %v61_v21, 0.0 }
  0x95   :  { %v81_v24 = vpack.c.bf16 %v64_v23, %v63_v22 }
  0x97   :  { %140 = vmatmul.bf16.vlgmr.msra.gmra.mxu1 %v81_v24 }
 0x114   :  { %v141_v29 = vpop.f32.mrf.mxu1 }
 0x115   :  { %v142_v31 = vadd.f32 %v366_v30, %v141_v29 }
 0x117   :  { %v146_v34 = vmax.f32 %v142_v31, 0.0 }
 0x11c   :  { %v143_v32 = vpop.f32.mrf.mxu1 }
 0x11d   :  { %v144_v33 = vadd.f32 %v366_v30, %v143_v32 }
 0x11f   :  { %v147_v35 = vmax.f32 %v144_v33, 0.0 }
 0x121   :  { %v165_v36 = vpack.c.bf16 %v147_v35, %v146_v34 }
 0x123   :  { %224 = vmatmul.bf16.vlgmr.msra.gmra.mxu2 %v165_v36 }
 0x1a6   :  { %v225_v40 = vpop.f32.mrf.mxu2 }
 0x1a7   :  { %v226_v41 = vadd.f32 %v367_v39, %v225_v40 }
 0x1a9   :  { %v242_v42 = vsel %vm241_vm2, %v226_v41, 0.0  ;;  %v233_v43 = vsel %vm232_vm3, %v226_v41, 0.0 }
 0x1aa   :  { %244 = vadd.xlane.f32.xlu1 %v242_v42  ;;  %235 = vadd.xlane.f32.xlu0 %v233_v43 }
 0x1ae   :  { %v227_v44 = vpop.f32.mrf.mxu2 }
 0x1af   :  { %v228_v45 = vadd.f32 %v367_v39, %v227_v44 }
 0x1b1   :  { %v243_v46 = vsel %vm241_vm2, %v228_v45, 0.0  ;;  %v234_v47 = vsel %vm232_vm3, %v228_v45, 0.0 }
 0x1b2   :  { %246 = vadd.xlane.f32.xlu1 %v243_v46  ;;  %237 = vadd.xlane.f32.xlu0 %v234_v47 }
 0x21d   :  { %v245_v48 = vpop.xlane.xlu1 %244  ;;  %v236_v49 = vpop.xlane.xlu0 %235 }
 0x21e   :  { %v239_v50 = vmul.f32 0.25, %v236_v49 }
 0x220   :  { %v248_v52 = vsub.f32 %v245_v48, %v239_v50 }
 0x222   :  { %v250_v56 = vadd.f32 %v248_v52, %v226_v41 }
 0x225   :  { %v238_v51 = vpop.xlane.xlu0 %237  ;;  %v247_v54 = vpop.xlane.xlu1 %246 }
 0x226   :  { %v240_v53 = vmul.f32 0.25, %v238_v51 }
 0x228   :  { %v249_v55 = vsub.f32 %v247_v54, %v240_v53 }
 0x22a   :  { %v251_v57 = vadd.f32 %v249_v55, %v228_v45 }
 0x22c   :  { %v359_v58 = vpack.c.bf16 %v251_v57, %v250_v56 }
 0x22e   :  { %360 = vst [vmem:[#allocation5] sm:$0xff] %v359_v58  }
 0x22f   :  { %268 = dma.vmem_to_hbm [thread:$0]  %s261_s5, 128, %s263_s8, [#allocation4], %s421_s20, %s421_s20, %s422_s21  }
 0x230   :  { %418 = dma.done.wait [#allocation4], 128  }
 0x231   :  { %419 = vsyncadd [#allocation4], 4294967168 }
 0x232   :  { %273 = vsyncpa [#allocation3], 1 }
 0x233   :  { %274 = vsyncpa [#allocation4], 1 }

</bundles_post_ra>
